<compile_context>
chip_gen: v7x
topology: tpu7x:2x2x1
jax: 0.10.0
libtpu: 0.0.40
codegen_flags: <defaults>
</compile_context>

<pallas_src>
import functools

import jax
import jax.numpy as jnp
from jax.experimental import pallas as pl
from jax.experimental.pallas import tpu as pltpu

MARGIN = 1.0
EPS = 1e-6  # torch.nn.functional.pairwise_distance adds eps to the elementwise diff

# Keep per-chunk f32 intermediates around the vreg-file size so the inner loop
# never spills; chunk rows adapt to the (packed) feature width.
_CHUNK_TARGET_BYTES = 128 * 1024
_MAX_CHUNK_ROWS = 256


def _sublane_multiple(dtype):
    # f32 -> 8, bf16 -> 16, int8/fp8 -> 32 (sublane packing granularity).
    return max(8, 32 // jnp.dtype(dtype).itemsize)


def _round_down(x, m):
    return max(m, (x // m) * m)


def _chip_config():
    """Generation-aware VMEM budget, vmem limit and core-split count."""
    vmem_bytes = None
    try:
        vmem_bytes = int(pltpu.get_tpu_info().vmem_capacity_bytes)
    except Exception:
        vmem_bytes = None

    kind = ""
    try:
        kind = jax.devices()[0].device_kind.lower()
    except Exception:
        pass
    single_tc = any(t in kind for t in ("v5 lite", "v5e", "v6 lite", "v6e", "trillium"))

    if vmem_bytes is None:
        vmem_bytes = (128 << 20) if single_tc else (64 << 20)  # conservative default

    if vmem_bytes >= (100 << 20):      # v5e / v6e: 128 MiB physical VMEM
        tile_budget = 48 << 20         # 3 inputs x 2 pipeline buffers
        vmem_limit = 64 << 20
    else:                              # v7x (64 MiB) or unknown: stay conservative
        tile_budget = 24 << 20
        vmem_limit = 32 << 20

    num_splits = 1 if single_tc else 2
    return tile_budget, vmem_limit, num_splits


def _pick_tiling(n_rows, width, itemsize, tile_budget, sublane):
    """Rows per grid step (tile_n) and rows per inner-loop chunk."""
    row_bytes = width * itemsize
    # Rows per input per pipeline buffer that fill the byte budget
    # (3 inputs, double-buffered) -- no artificial row cap.
    fit = max(sublane, tile_budget // (3 * 2 * row_bytes))
    cap = _round_down(n_rows, sublane)          # don't tile wider than the batch
    tile = min(fit, cap)

    # Inner chunk keeps (chunk, width) f32 intermediates ~vreg-file sized.
    chunk = min(_MAX_CHUNK_ROWS, max(sublane, _CHUNK_TARGET_BYTES // (width * 4)))
    chunk = _round_down(chunk, sublane)

    if tile >= chunk:
        tile = _round_down(tile, chunk)         # tile is a multiple of chunk
    else:
        chunk = _round_down(tile, sublane)
        tile = chunk
    return tile, chunk


def _triplet_kernel(a_ref, p_ref, n_ref, o_ref, *, n_valid_rows, tile_n, chunk,
                    tiles_per_core, pack_k, d_orig, margin):
    c = pl.program_id(0)   # core-split index ("parallel"; serial loop on 1-TC chips)
    i = pl.program_id(1)   # tile index within this split's range ("arbitrary")

    @pl.when(i == 0)
    def _():
        o_ref[...] = jnp.zeros_like(o_ref)

    # Unclamped global tile index -> global row offset (used only for masking).
    tile_row0 = (c * tiles_per_core + i) * tile_n

    # Loop-invariant row iota, hoisted out of the chunk loop.
    row_iota = jax.lax.broadcasted_iota(jnp.int32, (chunk, pack_k), 0)

    def seg_sum(sq):
        # Per-sample squared-distance reduce.
        if pack_k == 1:
            return jnp.sum(sq, axis=-1, keepdims=True)                 # (chunk, 1)
        # Packed: k samples per lane row; exact segmented reduce via static
        # lane slices + lane-dim concat (keeps the epilogue lane-dense).
        parts = [jnp.sum(sq[:, s * d_orig:(s + 1) * d_orig], axis=-1, keepdims=True)
                 for s in range(pack_k)]
        return jnp.concatenate(parts, axis=-1)                          # (chunk, k)

    def body(j, acc):
        r0 = pl.multiple_of(j * chunk, chunk)
        a = a_ref[pl.ds(r0, chunk), :]
        p = p_ref[pl.ds(r0, chunk), :]
        n = n_ref[pl.ds(r0, chunk), :]
        if a.dtype != jnp.float32:
            a = a.astype(jnp.float32)
            p = p.astype(jnp.float32)
            n = n.astype(jnp.float32)

        # d(x, y) = || x - y + eps ||_2  (matches torch pairwise_distance defaults)
        diff_ap = a - p + EPS
        diff_an = a - n + EPS
        d2_ap = seg_sum(diff_ap * diff_ap)
        d2_an = seg_sum(diff_an * diff_an)
        per = jnp.maximum(jnp.sqrt(d2_ap) - jnp.sqrt(d2_an) + margin, 0.0)

        # Mask rows past the true batch: ragged last tile AND the duplicated
        # (clamped) tile on the second core split both land here, so padded /
        # duplicated rows contribute exactly 0.
        row = tile_row0 + r0 + row_iota
        per = jnp.where(row < n_valid_rows, per, 0.0)
        return acc + jnp.sum(per, keepdims=True)                        # (1, 1)

    num_chunks = tile_n // chunk
    total = jax.lax.fori_loop(0, num_chunks, body, jnp.zeros((1, 1), jnp.float32))
    o_ref[...] += total.reshape(1, 1, 1)


def triplet_loss(anchor, positive, negative, margin=MARGIN):
    N, D = anchor.shape
    assert positive.shape == (N, D) and negative.shape == (N, D)

    tile_budget, vmem_limit, num_splits = _chip_config()

    # Lane-dense packing for small D: view k = 128 // D consecutive samples as
    # one 128-lane row (pure reshape of contiguous memory, no copy).
    pack_k = 1
    if D < 128 and 128 % D == 0 and N % (128 // D) == 0:
        pack_k = 128 // D
    # TODO(synk): when N isn't a multiple of 128//D, pad N in the wrapper to keep
    # the packed path; it currently falls back to the (correct) unpacked path.

    rows = N // pack_k
    width = pack_k * D
    if pack_k > 1:
        anchor = anchor.reshape(rows, width)
        positive = positive.reshape(rows, width)
        negative = negative.reshape(rows, width)

    itemsize = jnp.dtype(anchor.dtype).itemsize
    sublane = _sublane_multiple(anchor.dtype)
    tile_n, chunk = _pick_tiling(rows, width, itemsize, tile_budget, sublane)

    num_tiles = pl.cdiv(rows, tile_n)
    num_splits = min(num_splits, num_tiles)
    tiles_per_core = pl.cdiv(num_tiles, num_splits)

    if num_splits == 1:
        def in_map(c, i):
            return (i, 0)
    else:
        def in_map(c, i):
            # Clamp so the DMA'd block never runs past the last valid block; the
            # kernel masks the duplicated rows via unclamped global row ids.
            return (jnp.minimum(c * tiles_per_core + i, num_tiles - 1), 0)

    in_spec = pl.BlockSpec((tile_n, width), in_map)
    # (1,1,1) block of a (num_splits,1,1) output: last two block dims equal the
    # array dims, so the (8,128) tiling constraint is satisfied.
    out_spec = pl.BlockSpec((1, 1, 1), lambda c, i: (c, 0, 0))

    kernel = functools.partial(
        _triplet_kernel,
        n_valid_rows=rows, tile_n=tile_n, chunk=chunk,
        tiles_per_core=tiles_per_core, pack_k=pack_k, d_orig=D, margin=margin)

    # TODO(synk): on v7x, verify grid axis 0 actually shards across the two
    # TensorCores under "parallel"; if not, switch it to pltpu.CORE_PARALLEL.
    partials = pl.pallas_call(
        kernel,
        out_shape=jax.ShapeDtypeStruct((num_splits, 1, 1), jnp.float32),
        grid_spec=pltpu.PrefetchScalarGridSpec(
            num_scalar_prefetch=0,
            grid=(num_splits, tiles_per_core),
            in_specs=[in_spec, in_spec, in_spec],
            out_specs=out_spec,
        ),
        compiler_params=pltpu.CompilerParams(
            dimension_semantics=("parallel", "arbitrary"),
            vmem_limit_bytes=vmem_limit,
        ),
    )(anchor, positive, negative)

    return jnp.sum(partials) / jnp.float32(N)


if __name__ == "__main__":
    key = jax.random.PRNGKey(0)

    def ref_loss(a, p, n):
        d_ap = jnp.sqrt(jnp.sum((a - p + EPS) ** 2, axis=-1))
        d_an = jnp.sqrt(jnp.sum((a - n + EPS) ** 2, axis=-1))
        return jnp.mean(jnp.maximum(d_ap - d_an + MARGIN, 0.0))

    # Case 1 exercises the lane-dense packed path (D=32 -> 4 samples per
    # 128-lane row) plus a ragged last tile / masking; case 2 exercises the
    # already lane-dense D=128 unpacked path.
    for (N, D) in ((104, 32), (24, 128)):
        key, k1, k2, k3 = jax.random.split(key, 4)
        anchor = jax.random.normal(k1, (N, D), dtype=jnp.float32)
        positive = jax.random.normal(k2, (N, D), dtype=jnp.float32)
        negative = jax.random.normal(k3, (N, D), dtype=jnp.float32)

        loss = triplet_loss(anchor, positive, negative)
        jax.block_until_ready(loss)

        ref = ref_loss(anchor, positive, negative)
        assert jnp.allclose(loss, ref, atol=1e-5, rtol=1e-5), (N, D, loss, ref)

    print("KERNEL_OK")
</pallas_src>

<mosaic_0001>
module attributes {stable_mosaic.version = 11 : i64} {
  func.func @_triplet_kernel(%arg0: i32, %arg1: i32, %arg2: memref<24x128xf32, #tpu.memory_space<vmem>>, %arg3: memref<24x128xf32, #tpu.memory_space<vmem>>, %arg4: memref<24x128xf32, #tpu.memory_space<vmem>>, %arg5: memref<1x1x1xf32, #tpu.memory_space<vmem>>) attributes {dimension_semantics = [#tpu.dimension_semantics<parallel>, #tpu.dimension_semantics<arbitrary>], iteration_bounds = array<i64: 2, 1>, scalar_prefetch = 0 : i64, scratch_operands = 0 : i64, tpu.core_type = #tpu.core_type<tc>, window_params = [{transform_indices = @transform_0, window_bounds = array<i64: 24, 128>}, {transform_indices = @transform_1, window_bounds = array<i64: 24, 128>}, {transform_indices = @transform_2, window_bounds = array<i64: 24, 128>}, {transform_indices = @transform_3, window_bounds = array<i64: 1, 1, 1>}]} {
    %c0_i32 = arith.constant 0 : i32
    %0 = arith.cmpi eq, %arg1, %c0_i32 : i32
    %1 = arith.extui %0 : i1 to i32
    %c0_i32_0 = arith.constant 0 : i32
    %2 = arith.cmpi ne, %1, %c0_i32_0 : i32
    scf.if %2 {
      %cst_26 = arith.constant 0.000000e+00 : f32
      %74 = vector.broadcast %cst_26 : f32 to vector<1x1x1xf32>
      %c0_27 = arith.constant 0 : index
      %c0_28 = arith.constant 0 : index
      %c0_29 = arith.constant 0 : index
      %75 = vector.load %arg5[%c0_27, %c0_28, %c0_29] : memref<1x1x1xf32, #tpu.memory_space<vmem>>, vector<1x1x1xf32>
      tpu.vector_store %arg5[%c0_27, %c0_28, %c0_29], %74 {strides = array<i32>} : memref<1x1x1xf32, #tpu.memory_space<vmem>>, vector<1x1x1xf32>,
    } else {
    }
    %c1_i32 = arith.constant 1 : i32
    %3 = arith.muli %arg0, %c1_i32 : i32
    %4 = arith.addi %3, %arg1 : i32
    %c24_i32 = arith.constant 24 : i32
    %5 = arith.muli %4, %c24_i32 : i32
    %6 = tpu.iota {dimensions = array<i32: 0>} : vector<24x4xi32>
    %cst = arith.constant 0.000000e+00 : f32
    %7 = vector.broadcast %cst : f32 to vector<1x1xf32>
    %c0_i32_1 = arith.constant 0 : i32
    %c24_i32_2 = arith.constant 24 : i32
    %8 = arith.muli %c0_i32_1, %c24_i32_2 : i32
    %9 = tpu.assume_multiple %8, 24 : i32
    %10 = arith.index_cast %9 : i32 to index
    %c0 = arith.constant 0 : index
    %11 = vector.load %arg2[%10, %c0] : memref<24x128xf32, #tpu.memory_space<vmem>>, vector<24x128xf32>
    %12 = arith.index_cast %9 : i32 to index
    %c0_3 = arith.constant 0 : index
    %13 = vector.load %arg3[%12, %c0_3] : memref<24x128xf32, #tpu.memory_space<vmem>>, vector<24x128xf32>
    %14 = arith.index_cast %9 : i32 to index
    %c0_4 = arith.constant 0 : index
    %15 = vector.load %arg4[%14, %c0_4] : memref<24x128xf32, #tpu.memory_space<vmem>>, vector<24x128xf32>
    %16 = arith.subf %11, %13 : vector<24x128xf32>
    %cst_5 = arith.constant 9.99999997E-7 : f32
    %17 = vector.broadcast %cst_5 : f32 to vector<24x128xf32>
    %18 = arith.addf %16, %17 : vector<24x128xf32>
    %19 = arith.subf %11, %15 : vector<24x128xf32>
    %cst_6 = arith.constant 9.99999997E-7 : f32
    %20 = vector.broadcast %cst_6 : f32 to vector<24x128xf32>
    %21 = arith.addf %19, %20 : vector<24x128xf32>
    %22 = arith.mulf %18, %18 : vector<24x128xf32>
    %23 = vector.extract_strided_slice %22 {offsets = [0, 0], sizes = [24, 32], strides = [1, 1]} : vector<24x128xf32> to vector<24x32xf32>
    %cst_7 = arith.constant dense<0.000000e+00> : vector<24xf32>
    %24 = vector.multi_reduction <add>, %23, %cst_7 [1] : vector<24x32xf32> to vector<24xf32>
    %25 = vector.shape_cast %24 : vector<24xf32> to vector<24x1xf32>
    %26 = vector.extract_strided_slice %22 {offsets = [0, 32], sizes = [24, 32], strides = [1, 1]} : vector<24x128xf32> to vector<24x32xf32>
    %cst_8 = arith.constant dense<0.000000e+00> : vector<24xf32>
    %27 = vector.multi_reduction <add>, %26, %cst_8 [1] : vector<24x32xf32> to vector<24xf32>
    %28 = vector.shape_cast %27 : vector<24xf32> to vector<24x1xf32>
    %29 = vector.extract_strided_slice %22 {offsets = [0, 64], sizes = [24, 32], strides = [1, 1]} : vector<24x128xf32> to vector<24x32xf32>
    %cst_9 = arith.constant dense<0.000000e+00> : vector<24xf32>
    %30 = vector.multi_reduction <add>, %29, %cst_9 [1] : vector<24x32xf32> to vector<24xf32>
    %31 = vector.shape_cast %30 : vector<24xf32> to vector<24x1xf32>
    %32 = vector.extract_strided_slice %22 {offsets = [0, 96], sizes = [24, 32], strides = [1, 1]} : vector<24x128xf32> to vector<24x32xf32>
    %cst_10 = arith.constant dense<0.000000e+00> : vector<24xf32>
    %33 = vector.multi_reduction <add>, %32, %cst_10 [1] : vector<24x32xf32> to vector<24xf32>
    %34 = vector.shape_cast %33 : vector<24xf32> to vector<24x1xf32>
    %35 = tpu.concatenate %25, %28, %31, %34 in 1 : vector<24x1xf32>, vector<24x1xf32>, vector<24x1xf32>, vector<24x1xf32> -> vector<24x4xf32>
    %36 = arith.mulf %21, %21 : vector<24x128xf32>
    %37 = vector.extract_strided_slice %36 {offsets = [0, 0], sizes = [24, 32], strides = [1, 1]} : vector<24x128xf32> to vector<24x32xf32>
    %cst_11 = arith.constant dense<0.000000e+00> : vector<24xf32>
    %38 = vector.multi_reduction <add>, %37, %cst_11 [1] : vector<24x32xf32> to vector<24xf32>
    %39 = vector.shape_cast %38 : vector<24xf32> to vector<24x1xf32>
    %40 = vector.extract_strided_slice %36 {offsets = [0, 32], sizes = [24, 32], strides = [1, 1]} : vector<24x128xf32> to vector<24x32xf32>
    %cst_12 = arith.constant dense<0.000000e+00> : vector<24xf32>
    %41 = vector.multi_reduction <add>, %40, %cst_12 [1] : vector<24x32xf32> to vector<24xf32>
    %42 = vector.shape_cast %41 : vector<24xf32> to vector<24x1xf32>
    %43 = vector.extract_strided_slice %36 {offsets = [0, 64], sizes = [24, 32], strides = [1, 1]} : vector<24x128xf32> to vector<24x32xf32>
    %cst_13 = arith.constant dense<0.000000e+00> : vector<24xf32>
    %44 = vector.multi_reduction <add>, %43, %cst_13 [1] : vector<24x32xf32> to vector<24xf32>
    %45 = vector.shape_cast %44 : vector<24xf32> to vector<24x1xf32>
    %46 = vector.extract_strided_slice %36 {offsets = [0, 96], sizes = [24, 32], strides = [1, 1]} : vector<24x128xf32> to vector<24x32xf32>
    %cst_14 = arith.constant dense<0.000000e+00> : vector<24xf32>
    %47 = vector.multi_reduction <add>, %46, %cst_14 [1] : vector<24x32xf32> to vector<24xf32>
    %48 = vector.shape_cast %47 : vector<24xf32> to vector<24x1xf32>
    %49 = tpu.concatenate %39, %42, %45, %48 in 1 : vector<24x1xf32>, vector<24x1xf32>, vector<24x1xf32>, vector<24x1xf32> -> vector<24x4xf32>
    %50 = math.sqrt %35 : vector<24x4xf32>
    %51 = math.sqrt %49 : vector<24x4xf32>
    %52 = arith.subf %50, %51 : vector<24x4xf32>
    %cst_15 = arith.constant 1.000000e+00 : f32
    %53 = vector.broadcast %cst_15 : f32 to vector<24x4xf32>
    %54 = arith.addf %52, %53 : vector<24x4xf32>
    %cst_16 = arith.constant 0.000000e+00 : f32
    %55 = vector.broadcast %cst_16 : f32 to vector<24x4xf32>
    %56 = arith.maximumf %54, %55 : vector<24x4xf32>
    %57 = arith.addi %5, %9 : i32
    %58 = vector.broadcast %57 : i32 to vector<24x4xi32>
    %59 = arith.addi %58, %6 : vector<24x4xi32>
    %c26_i32 = arith.constant 26 : i32
    %60 = vector.broadcast %c26_i32 : i32 to vector<24x4xi32>
    %61 = arith.cmpi slt, %59, %60 : vector<24x4xi32>
    %cst_17 = arith.constant 0.000000e+00 : f32
    %62 = vector.broadcast %cst_17 : f32 to vector<24x4xf32>
    %63 = arith.select %61, %56, %62 : vector<24x4xi1>, vector<24x4xf32>
    %64 = vector.shape_cast %63 : vector<24x4xf32> to vector<1x24x4xf32>
    %cst_18 = arith.constant dense<0.000000e+00> : vector<1xf32>
    %65 = vector.multi_reduction <add>, %64, %cst_18 [1, 2] : vector<1x24x4xf32> to vector<1xf32>
    %66 = vector.shape_cast %65 : vector<1xf32> to vector<1x1x1xf32>
    %67 = vector.extract %66[0, 0, 0] : f32 from vector<1x1x1xf32>
    %68 = vector.broadcast %67 : f32 to vector<1x1xf32>
    %69 = arith.addf %7, %68 : vector<1x1xf32>
    %c1_i32_19 = arith.constant 1 : i32
    %c0_20 = arith.constant 0 : index
    %c0_21 = arith.constant 0 : index
    %c0_22 = arith.constant 0 : index
    %70 = vector.load %arg5[%c0_20, %c0_21, %c0_22] : memref<1x1x1xf32, #tpu.memory_space<vmem>>, vector<1x1x1xf32>
    %71 = vector.shape_cast %69 : vector<1x1xf32> to vector<1x1x1xf32>
    %72 = arith.addf %70, %71 : vector<1x1x1xf32>
    %c0_23 = arith.constant 0 : index
    %c0_24 = arith.constant 0 : index
    %c0_25 = arith.constant 0 : index
    %73 = vector.load %arg5[%c0_23, %c0_24, %c0_25] : memref<1x1x1xf32, #tpu.memory_space<vmem>>, vector<1x1x1xf32>
    tpu.vector_store %arg5[%c0_23, %c0_24, %c0_25], %72 {strides = array<i32>} : memref<1x1x1xf32, #tpu.memory_space<vmem>>, vector<1x1x1xf32>,
    return
  }
  func.func @transform_0(%arg0: i32, %arg1: i32) -> (i32, i32) {
    %c1_i32 = arith.constant 1 : i32
    %0 = arith.muli %arg0, %c1_i32 : i32
    %1 = arith.addi %0, %arg1 : i32
    %c1_i32_0 = arith.constant 1 : i32
    %2 = arith.minsi %1, %c1_i32_0 : i32
    %c0_i32 = arith.constant 0 : i32
    %c0_i32_1 = arith.constant 0 : i32
    return %2, %c0_i32 : i32, i32
  }
  func.func @transform_1(%arg0: i32, %arg1: i32) -> (i32, i32) {
    %c1_i32 = arith.constant 1 : i32
    %0 = arith.muli %arg0, %c1_i32 : i32
    %1 = arith.addi %0, %arg1 : i32
    %c1_i32_0 = arith.constant 1 : i32
    %2 = arith.minsi %1, %c1_i32_0 : i32
    %c0_i32 = arith.constant 0 : i32
    %c0_i32_1 = arith.constant 0 : i32
    return %2, %c0_i32 : i32, i32
  }
  func.func @transform_2(%arg0: i32, %arg1: i32) -> (i32, i32) {
    %c1_i32 = arith.constant 1 : i32
    %0 = arith.muli %arg0, %c1_i32 : i32
    %1 = arith.addi %0, %arg1 : i32
    %c1_i32_0 = arith.constant 1 : i32
    %2 = arith.minsi %1, %c1_i32_0 : i32
    %c0_i32 = arith.constant 0 : i32
    %c0_i32_1 = arith.constant 0 : i32
    return %2, %c0_i32 : i32, i32
  }
  func.func @transform_3(%arg0: i32, %arg1: i32) -> (i32, i32, i32) {
    %c0_i32 = arith.constant 0 : i32
    %c0_i32_0 = arith.constant 0 : i32
    %c0_i32_1 = arith.constant 0 : i32
    return %arg0, %c0_i32, %c0_i32_0 : i32, i32, i32
  }
}

</mosaic_0001>

<bundles_post_ra>
// kernel: tpu_custom_call.1
= control target key start
LH: loop header
LB: loop body
LE: loop exit
PB: predicated region body
PF: predicated region fallthrough
CT: control target
= control target key end

     0   :  { %8 = vsyncpa [#allocation3], 0  ;;  %s1289_s0 = inlined_call_operand.hbm [shape: f32[26,128], index: 0, kind: input, shape index: {}]   ;;  %s1290_s1 = inlined_call_operand.hbm [shape: f32[26,128], index: 1, kind: input, shape index: {}]   ;;  %s1291_s2 = inlined_call_operand.hbm [shape: f32[26,128], index: 2, kind: input, shape index: {}]   ;;  %s1292_s3 = inlined_call_operand.vmem [shape: f32[2,1,1], index: 3, kind: output, shape index: {}]  }
   0x1   :  { %10 = vsyncpa [#allocation3 + $0x1], 0 }
   0x2   :  { %11 = vsyncpa [#allocation5], 0 }
   0x3   :  { %13 = vsyncpa [#allocation5 + $0x1], 0  ;;  %s1008_s12 = smov 0   ;;  %s1010_s13 = smov 0  }
   0x4   :  { %s1012_s14 = smov 0   ;;  %s1014_s15 = smov 0  }
   0x5   :  { %s1016_s16 = smov 0   ;;  %s1018_s17 = smov 0  }
   0x6 LB: > { %s31_s18 = sadd.s32 1, %s969_s16  ;;  %p36_p1 = scmp.lt.s32.totalorder %s969_s16, 1  ;;  %s973_s17 = sphi %s1018_s17, %s19_s17   ;;  %s969_s16 = sphi %s1016_s16, %s1299_s16   ;;  %s965_s15 = sphi %s1014_s15, %s1298_s15   ;;  %s961_s14 = sphi %s1012_s14, %s1297_s14   ;;  %s957_s13 = sphi %s1010_s13, %s1296_s13   ;;  %s953_s12 = sphi %s1008_s12, %s1295_s12  }
   0x7   : > { %p33_p0 = scmp.ge.s32.totalorder %s31_s18, 2  ;;  %s731_s19 = sadd.s32 4294967295, %s973_s17  }
   0x8   : > { %p51_p2 = scmp.ne.s32.totalorder %s961_s14, %s957_s13  ;;  %p52_p4 = scmp.eq.s32.totalorder %s973_s17, 0 }
   0x9   : > { %s1301_s18 = smov (%p33_p0, %s31_s18), 0  ;;  %p57_p5 = scmp.ne.s32.totalorder %s957_s13, %s953_s12 }
   0xa   : > { %s1044_s20 = scalar_select %p36_p1, %s969_s16, 1 }
   0xb   : > { %p39_p3 = scmp.lt.s32.totalorder %s1301_s18, 1  ;;  %p58_p6 = scmp.eq.s32.totalorder %s731_s19, 0 }
   0xc   : > { %p1052_p7 = por %p52_p4, %p51_p2  ;;  %s44_s25 = sadd.s32 1, %s961_s14 }
   0xd   : > { %s40_s21 = scalar_select %p39_p3, %s1301_s18, 1 }
   0xe   : > { %p1056_p8 = por %p58_p6, %p57_p5  ;;  %p734_p10 = scmp.ge.s32.totalorder %s973_s17, 2 }
   0xf   : > { %s41_s24 = ssub.s32 %s1044_s20, %s40_s21 }
  0x10   : > { %p42_p9 = scmp.eq.s32.totalorder %s41_s24, 0  ;;  %167 = sbr.rel (%p734_p10) target bundleno = 128 (0x80), region = 16 }
  0x12   : > { %s1063_s26 = scalar_select %p42_p9, %s961_s14, %s44_s25  }
  0x17   : > { %170 = sbr.rel (!%p1052_p7) target bundleno = 58 (0x3a), region = 20  ;;  %s171_s27 = sand.u32 (%p1052_p7), 1, %s961_s14  }
  0x18   : > { %s179_s28 = smul.u32 (%p1052_p7), 3, %s1044_s20  ;;  %s1073_s6 = scalar_lea.sflag (%p1052_p7), [#allocation3], %s171_s27 }
  0x19   : > { %s756_s29 = smul.u32 (%p1052_p7), 24, %s171_s27 }
  0x1a   : > { %s180_s30 = ssub.s32 (%p1052_p7), 4, %s179_s28 }
  0x1b   : > { %p181_p11 = scmp.lt.s32.totalorder (%p1052_p7), %s180_s30, 3  ;;  %s175_s7 = scalar_lea.vmem (%p1052_p7), [#allocation2], %s756_s29 }
  0x1e   : > { %s1303_s30 = smov (!%p181_p11, %s180_s30), 3 }
  0x1f   : > { %s1070_s4 = sshll.u32 %s1303_s30, 7 }
  0x20   : > { %s185_s5 = ssub.s32 384, %s1070_s4 }
  0x21   : > { %186 = vsyncadd %s1073_s6, %s185_s5  ;;  %p736_p12 = scmp.ne.s32.totalorder %s1070_s4, 0  ;;  %s753_s8 = smul.u32 384, %s1044_s20 }
  0x22   : > { %s191_s9 = sshll.u32 %s175_s7, 4  ;;  %s839_s27 = scalar_lea.hbm %s1289_s0, 512  ;;  %s1083_s9 = int_to_ptr.vmem [resolvable:$true] %s191_s9 }
  0x23   : > { %s1081_s12 = scalar_lea.hbm %s1289_s0, %s753_s8 }
  0x24   : > { %s835_s21 = scalar_lea.hbm %s1081_s12, %s1070_s4  ;;  %p840_p2 = scmp.lt.u32.totalorder %s1081_s12, %s1289_s0 }
  0x25   : > { %p836_p13 = scmp.ne.s32.totalorder %s1081_s12, %s835_s21  ;;  %p841_p3 = scmp.lt.u32.totalorder %s839_s27, %s835_s21 }
  0x26   : > { %p843_p5 = scmp.lt.u32.totalorder %s835_s21, %s1081_s12 }
  0x27   : > { %p837_p0 = pnand %p836_p13, %p736_p12  ;;  %p842_p4 = por %p841_p3, %p840_p2 }
  0x29   : > { %p838_p1 = pneg %p837_p0  ;;  %p844_p6 = por %p843_p5, %p842_p4 }
  0x2b   : > { %p845_p9 = pnand %p844_p6, %p838_p1 }
  0x2d   : > { %848 = shalt.err (!%p845_p9)
}
  0x2e   : > { %s849_s30 = scalar_lea.vmem %s1083_s9, %s1070_s4  ;;  %s975_s5 = smov [#allocation2]  }
  0x2f   : > { %p850_p10 = scmp.ne.s32.totalorder %s1083_s9, %s849_s30  ;;  %s853_s7 = sshll.u32 %s975_s5, 4  ;;  %s854_s7 = int_to_ptr.vmem [resolvable:$false] %s853_s7 }
  0x30   : > { %s855_s8 = scalar_lea.vmem %s854_s7, 768  ;;  %p856_p0 = scmp.lt.s32.totalorder %s1083_s9, %s854_s7 }
  0x31   : > { %p851_p11 = pnand %p850_p10, %p736_p12  ;;  %p857_p2 = scmp.lt.s32.totalorder %s855_s8, %s849_s30 }
  0x33   : > { %p852_p13 = pneg %p851_p11  ;;  %p858_p3 = por %p857_p2, %p856_p0 }
  0x35   : > { %p859_p4 = pnand %p858_p3, %p852_p13 }
  0x37   : > { %862 = shalt.err (!%p859_p4)
}
  0x38   : > { %s976_s10 = smov 128   ;;  %s977_s11 = smov 8  }
  0x39   : > { %197 = dma.hbm_to_vmem [thread:$0]  (%p736_p12), %s1081_s12, %s1070_s4, %s1083_s9, %s1073_s6, %s976_s10, %s976_s10, %s977_s11  }
  0x3a PF: > { %200 = sbr.rel (!%p1052_p7) target bundleno = 93 (0x5d), region = 24  ;;  %s201_s21 = sand.u32 (%p1052_p7), 1, %s973_s17  }
  0x3b   : > { %s203_s24 = sand.u32 (%p1052_p7), 1, %s961_s14   ;;  %s209_s27 = smul.u32 (%p1052_p7), 3, %s1044_s20 }
  0x3c   : > { %s757_s25 = smul.u32 (%p1052_p7), 24, %s203_s24  ;;  %s1118_s5 = scalar_lea.sflag (%p1052_p7), [#allocation5], %s201_s21 }
  0x3d   : > { %s210_s28 = ssub.s32 (%p1052_p7), 4, %s209_s27 }
  0x3e   : > { %p211_p1 = scmp.lt.s32.totalorder (%p1052_p7), %s210_s28, 3  ;;  %s205_s4 = scalar_lea.vmem (%p1052_p7), [#allocation4], %s757_s25 }
  0x41   : > { %s1305_s28 = smov (!%p211_p1, %s210_s28), 3 }
  0x42   : > { %s1115_s29 = sshll.u32 %s1305_s28, 7 }
  0x43   : > { %s215_s30 = ssub.s32 384, %s1115_s29 }
  0x44   : > { %216 = vsyncadd %s1118_s5, %s215_s30  ;;  %p741_p12 = scmp.ne.s32.totalorder %s1115_s29, 0  ;;  %s754_s6 = smul.u32 384, %s1044_s20 }
  0x45   : > { %s221_s9 = sshll.u32 %s205_s4, 4  ;;  %s867_s24 = scalar_lea.hbm %s1290_s1, 512  ;;  %s1128_s9 = int_to_ptr.vmem [resolvable:$true] %s221_s9 }
  0x46   : > { %s1126_s8 = scalar_lea.hbm %s1290_s1, %s754_s6 }
  0x47   : > { %s863_s10 = scalar_lea.hbm %s1126_s8, %s1115_s29  ;;  %p868_p10 = scmp.lt.u32.totalorder %s1126_s8, %s1290_s1 }
  0x48   : > { %p864_p5 = scmp.ne.s32.totalorder %s1126_s8, %s863_s10  ;;  %p869_p11 = scmp.lt.u32.totalorder %s867_s24, %s863_s10 }
  0x49   : > { %p871_p0 = scmp.lt.u32.totalorder %s863_s10, %s1126_s8 }
  0x4a   : > { %p865_p6 = pnand %p864_p5, %p741_p12  ;;  %p870_p13 = por %p869_p11, %p868_p10 }
  0x4c   : > { %p866_p9 = pneg %p865_p6  ;;  %p872_p2 = por %p871_p0, %p870_p13 }
  0x4e   : > { %p873_p3 = pnand %p872_p2, %p866_p9 }
  0x50   : > { %876 = shalt.err (!%p873_p3)
}
  0x51   : > { %s877_s28 = scalar_lea.vmem %s1128_s9, %s1115_s29  ;;  %s978_s30 = smov [#allocation4]  }
  0x52   : > { %p878_p4 = scmp.ne.s32.totalorder %s1128_s9, %s877_s28  ;;  %s881_s4 = sshll.u32 %s978_s30, 4  ;;  %s882_s4 = int_to_ptr.vmem [resolvable:$false] %s881_s4 }
  0x53   : > { %s883_s6 = scalar_lea.vmem %s882_s4, 768  ;;  %p884_p6 = scmp.lt.s32.totalorder %s1128_s9, %s882_s4 }
  0x54   : > { %p879_p1 = pnand %p878_p4, %p741_p12  ;;  %p885_p10 = scmp.lt.s32.totalorder %s883_s6, %s877_s28 }
  0x56   : > { %p880_p5 = pneg %p879_p1  ;;  %p886_p11 = por %p885_p10, %p884_p6 }
  0x58   : > { %p887_p13 = pnand %p886_p11, %p880_p5 }
  0x5a   : > { %890 = shalt.err (!%p887_p13)
}
  0x5b   : > { %s979_s12 = smov 128   ;;  %s980_s7 = smov 8  }
  0x5c   : > { %227 = dma.hbm_to_vmem [thread:$0]  (%p741_p12), %s1126_s8, %s1115_s29, %s1128_s9, %s1118_s5, %s979_s12, %s979_s12, %s980_s7  }
  0x5d PF: > { %230 = sbr.rel (!%p1052_p7) target bundleno = 128 (0x80), region = 28  ;;  %s231_s10 = sand.u32 (%p1052_p7), 1, %s973_s17  }
  0x5e   : > { %s233_s11 = sand.u32 (%p1052_p7), 1, %s961_s14   ;;  %s239_s24 = smul.u32 (%p1052_p7), 3, %s1044_s20 }
  0x5f   : > { %s758_s21 = smul.u32 (%p1052_p7), 24, %s233_s11  ;;  %s1163_s30 = scalar_lea.sflag (%p1052_p7), [#allocation5], %s231_s10 }
  0x60   : > { %s240_s25 = ssub.s32 (%p1052_p7), 4, %s239_s24 }
  0x61   : > { %p241_p9 = scmp.lt.s32.totalorder (%p1052_p7), %s240_s25, 3  ;;  %s235_s29 = scalar_lea.vmem (%p1052_p7), [#allocation6], %s758_s21 }
  0x64   : > { %s1307_s25 = smov (!%p241_p9, %s240_s25), 3 }
  0x65   : > { %s1160_s27 = sshll.u32 %s1307_s25, 7 }
  0x66   : > { %s245_s28 = ssub.s32 384, %s1160_s27 }
  0x67   : > { %246 = vsyncadd %s1163_s30, %s245_s28  ;;  %p746_p7 = scmp.ne.s32.totalorder %s1160_s27, 0  ;;  %s755_s22 = smul.u32 384, %s1044_s20 }
  0x68   : > { %s251_s5 = sshll.u32 %s235_s29, 4  ;;  %s895_s20 = scalar_lea.hbm %s1291_s2, 512  ;;  %s1173_s5 = int_to_ptr.vmem [resolvable:$true] %s251_s5 }
  0x69   : > { %s1171_s4 = scalar_lea.hbm %s1291_s2, %s755_s22 }
  0x6a   : > { %s891_s6 = scalar_lea.hbm %s1171_s4, %s1160_s27  ;;  %p896_p3 = scmp.lt.u32.totalorder %s1171_s4, %s1291_s2 }
  0x6b   : > { %p892_p12 = scmp.ne.s32.totalorder %s1171_s4, %s891_s6  ;;  %p897_p4 = scmp.lt.u32.totalorder %s895_s20, %s891_s6 }
  0x6c   : > { %p899_p5 = scmp.lt.u32.totalorder %s891_s6, %s1171_s4 }
  0x6d   : > { %p893_p0 = pnand %p892_p12, %p746_p7  ;;  %p898_p1 = por %p897_p4, %p896_p3 }
  0x6f   : > { %p894_p2 = pneg %p893_p0  ;;  %p900_p6 = por %p899_p5, %p898_p1 }
  0x71   : > { %p901_p10 = pnand %p900_p6, %p894_p2 }
  0x73   : > { %904 = shalt.err (!%p901_p10)
}
  0x74   : > { %s905_s21 = scalar_lea.vmem %s1173_s5, %s1160_s27  ;;  %s981_s24 = smov [#allocation6]  }
  0x75   : > { %p906_p11 = scmp.ne.s32.totalorder %s1173_s5, %s905_s21  ;;  %s909_s25 = sshll.u32 %s981_s24, 4  ;;  %s910_s25 = int_to_ptr.vmem [resolvable:$false] %s909_s25 }
  0x76   : > { %s911_s28 = scalar_lea.vmem %s910_s25, 768  ;;  %p912_p12 = scmp.lt.s32.totalorder %s1173_s5, %s910_s25 }
  0x77   : > { %p907_p13 = pnand %p906_p11, %p746_p7  ;;  %p913_p0 = scmp.lt.s32.totalorder %s911_s28, %s905_s21 }
  0x79   : > { %p908_p9 = pneg %p907_p13  ;;  %p914_p3 = por %p913_p0, %p912_p12 }
  0x7b   : > { %p915_p4 = pnand %p914_p3, %p908_p9 }
  0x7d   : > { %918 = shalt.err (!%p915_p4)
}
  0x7e   : > { %s982_s29 = smov 128   ;;  %s983_s22 = smov 8  }
  0x7f   : > { %257 = dma.hbm_to_vmem [thread:$0]  (%p746_p7), %s1171_s4, %s1160_s27, %s1173_s5, %s1163_s30, %s982_s29, %s982_s29, %s983_s22  }
  0x80 PF: > { %p750_p2 = scmp.ge.s32.totalorder %s973_s17, 1  ;;  %p259_p1 = scmp.lt.s32.totalorder %s973_s17, 3 }
  0x82   : > { %p260_p5 = pnand %p750_p2, %p259_p1 }
  0x83   : > { %s265_s9 = sand.u32 (!%p260_p5), 1, %s957_s13  }
  0x84   : > { %263 = sbr.rel (%p260_p5) target bundleno = 682 (0x2aa), region = 32  ;;  %s266_s6 = scalar_lea.sflag (!%p260_p5), [#allocation3], %s265_s9 }
  0x85   : > { %s759_s8 = smul.u32 (!%p260_p5), 24, %s265_s9 }
  0x87   : > { %s269_s12 = scalar_lea.vmem (!%p260_p5), [#allocation2], %s759_s8 }
  0x8b   : > { %944 = dma.done.wait (%p1056_p8), %s266_s6, 384  }
  0x8c   : > { %946 = vsyncadd (%p1056_p8), %s266_s6, 4294966912  ;;  %s274_s27 = sand.u32 1, %s731_s19   ;;  %s278_s5 = scalar_lea.vmem [#allocation4], %s759_s8 }
  0x8d   : > { %s275_s30 = scalar_lea.sflag [#allocation5], %s274_s27 }
  0x8e   : > { %948 = dma.done.wait (%p1056_p8), %s275_s30, 768  }
  0x8f   : > { %950 = vsyncadd (%p1056_p8), %s275_s30, 4294966528  ;;  %v357_v0 = vld [vmem:[%s269_s12] sm:$0xff]  ;;  %s287_s4 = scalar_lea.vmem [#allocation6], %s759_s8  ;;  %v360_v2 = vld [vmem:[%s278_s5] sm:$0xff]  ;;  %s984_s19 = smov 96   ;;  %vm381_vm0 = vcmask 261120  }
  0x90   : > { %v363_v1 = vld [vmem:[%s287_s4] sm:$0xff]  ;;  %v366_v4 = vsub.f32 %v357_v0, %v360_v2  ;;  %v358_v5 = vld [vmem:[%s269_s12 + $0x8] sm:$0xff]  ;;  %v361_v7 = vld [vmem:[%s278_s5 + $0x8] sm:$0xff]  ;;  %s985_s23 = smov 64   ;;  %s986_s7 = smov 32   ;;  %vm448_vm1 = vcmask 7168  }
  0x91   : > { %v372_v3 = vsub.f32 %v357_v0, %v363_v1  ;;  %v364_v6 = vld [vmem:[%s287_s4 + $0x8] sm:$0xff]  ;;  %v367_v9 = vsub.f32 %v358_v5, %v361_v7  ;;  %v359_v18 = vld [vmem:[%s269_s12 + $0x10] sm:$0xff]  ;;  %v362_v19 = vld [vmem:[%s278_s5 + $0x10] sm:$0xff]  ;;  %vm452_vm2 = vcmask 15360   ;;  %vm456_vm3 = vcmask 23552   ;;  %s352_s20 = smul.u32 24, %s965_s15 }
  0x92   : > { %v373_v8 = vsub.f32 %v358_v5, %v364_v6  ;;  %v369_v11 = vadd.f32 1e-06, %v366_v4  ;;  %v368_v20 = vsub.f32 %v359_v18, %v362_v19  ;;  %v365_v21 = vld [vmem:[%s287_s4 + $0x10] sm:$0xff]  ;;  %p342_p8 = scmp.lt.s32.totalorder %s965_s15, 1 }
  0x93   : > { %v375_v10 = vadd.f32 1e-06, %v372_v3  ;;  %v370_v13 = vadd.f32 1e-06, %v367_v9  ;;  %v374_v23 = vsub.f32 %v359_v18, %v365_v21 }
  0x94   : > { %v376_v12 = vadd.f32 1e-06, %v373_v8  ;;  %v378_v15 = vmul.f32 %v369_v11, %v369_v11  ;;  %v371_v22 = vadd.f32 1e-06, %v368_v20  ;;  %s1309_s15 = smov (!%p342_p8, %s965_s15), 1 }
  0x95   : > { %v460_v14 = vmul.f32 %v375_v10, %v375_v10  ;;  %v379_v17 = vmul.f32 %v370_v13, %v370_v13  ;;  %v377_v25 = vadd.f32 1e-06, %v374_v23  ;;  %s344_s21 = scalar_lea.vmem %s1292_s3, %s1309_s15 }
  0x96   : > { %394 = vrot.lane.b32.xlu0 %v378_v15, %s984_s19  ;;  %v461_v16 = vmul.f32 %v376_v12, %v376_v12  ;;  %v380_v24 = vmul.f32 %v371_v22, %v371_v22  ;;  %v382_v27 = vsel %vm381_vm0, %v378_v15, 0.0 }
  0x97   : > { %475 = vrot.lane.b32.xlu1 %v460_v14, %s984_s19  ;;  %v462_v26 = vmul.f32 %v377_v25, %v377_v25  ;;  %v385_v29 = vsel %vm381_vm0, %v379_v17, 0.0  ;;  %v463_v30 = vsel %vm381_vm0, %v460_v14, 0.0 }
  0x98   : > { %v466_v28 = vsel %vm381_vm0, %v461_v16, 0.0  ;;  %v388_v31 = vsel %vm381_vm0, %v380_v24, 0.0 }
  0x99   : > { %v469_v32 = vsel %vm381_vm0, %v462_v26, 0.0 }
  0x9a   : > { %396 = vrot.lane.b32.xlu0 %v379_v17, %s984_s19 }
  0x9b   : > { %477 = vrot.lane.b32.xlu1 %v461_v16, %s984_s19 }
  0x9e   : > { %412 = vrot.lane.b32.xlu0 %v378_v15, %s985_s23 }
  0x9f   : > { %414 = vrot.lane.b32.xlu1 %v379_v17, %s985_s23 }
  0xa2   : > { %493 = vrot.lane.b32.xlu0 %v460_v14, %s985_s23 }
  0xa3   : > { %495 = vrot.lane.b32.xlu1 %v461_v16, %s985_s23 }
  0xa6   : > { %398 = vrot.lane.b32.xlu0 %v380_v24, %s984_s19 }
  0xa7   : > { %430 = vrot.lane.b32.xlu1 %v378_v15, %s986_s7 }
  0xaa   : > { %432 = vrot.lane.b32.xlu0 %v379_v17, %s986_s7 }
  0xab   : > { %479 = vrot.lane.b32.xlu1 %v462_v26, %s984_s19 }
  0xae   : > { %511 = vrot.lane.b32.xlu0 %v460_v14, %s986_s7 }
  0xaf   : > { %513 = vrot.lane.b32.xlu1 %v461_v16, %s986_s7 }
  0xb2   : > { %416 = vrot.lane.b32.xlu0 %v380_v24, %s985_s23 }
  0xb3   : > { %497 = vrot.lane.b32.xlu1 %v462_v26, %s985_s23 }
  0xb6   : > { %434 = vrot.lane.b32.xlu0 %v380_v24, %s986_s7 }
  0xb7   : > { %515 = vrot.lane.b32.xlu1 %v462_v26, %s986_s7 }
  0xd5   : > { %383 = vadd.xlane.f32.xlu0 %v382_v27 }
  0xd9   : > { %467 = vadd.xlane.f32.xlu0 %v466_v28 }
  0xdb   : > { %386 = vadd.xlane.f32.xlu1 %v385_v29 }
  0xdf   : > { %464 = vadd.xlane.f32.xlu1 %v463_v30 }
  0xe3   : > { %389 = vadd.xlane.f32.xlu1 %v388_v31 }
  0xe7   : > { %470 = vadd.xlane.f32.xlu1 %v469_v32 }
 0x108   : > { %v395_v34 = vpop.permute.xlu0 %394 }
 0x109   : > { %v476_v33 = vpop.permute.xlu1 %475  ;;  %v403_v35 = vsel %vm381_vm0, %v395_v34, 0.0 }
 0x10a   : > { %v484_v36 = vsel %vm381_vm0, %v476_v33, 0.0  ;;  %404 = vadd.xlane.f32.xlu0 %v403_v35 }
 0x10b   : > { %485 = vadd.xlane.f32.xlu1 %v484_v36 }
 0x10c   : > { %v397_v38 = vpop.permute.xlu0 %396 }
 0x10d   : > { %v478_v37 = vpop.permute.xlu1 %477  ;;  %v406_v39 = vsel %vm381_vm0, %v397_v38, 0.0 }
 0x10e   : > { %407 = vadd.xlane.f32.xlu0 %v406_v39  ;;  %v487_v40 = vsel %vm381_vm0, %v478_v37, 0.0 }
 0x110   : > { %v413_v42 = vpop.permute.xlu0 %412 }
 0x111   : > { %v415_v41 = vpop.permute.xlu1 %414  ;;  %v421_v43 = vsel %vm381_vm0, %v413_v42, 0.0 }
 0x112   : > { %422 = vadd.xlane.f32.xlu1 %v421_v43  ;;  %488 = vadd.xlane.f32.xlu0 %v487_v40  ;;  %v424_v44 = vsel %vm381_vm0, %v415_v41, 0.0 }
 0x114   : > { %v494_v46 = vpop.permute.xlu0 %493 }
 0x115   : > { %v496_v45 = vpop.permute.xlu1 %495  ;;  %v502_v47 = vsel %vm381_vm0, %v494_v46, 0.0 }
 0x116   : > { %503 = vadd.xlane.f32.xlu1 %v502_v47  ;;  %425 = vadd.xlane.f32.xlu0 %v424_v44  ;;  %v505_v48 = vsel %vm381_vm0, %v496_v45, 0.0 }
 0x118   : > { %v399_v50 = vpop.permute.xlu0 %398 }
 0x119   : > { %v431_v49 = vpop.permute.xlu1 %430  ;;  %v409_v52 = vsel %vm381_vm0, %v399_v50, 0.0 }
 0x11a   : > { %v439_v51 = vsel %vm381_vm0, %v431_v49, 0.0  ;;  %506 = vadd.xlane.f32.xlu0 %v505_v48  ;;  %v353_v49 = vlaneseq }
 0x11b   : > { %440 = vadd.xlane.f32.xlu1 %v439_v51 }
 0x11c   : > { %v433_v53 = vpop.permute.xlu0 %432 }
 0x11d   : > { %v480_v54 = vpop.permute.xlu1 %479  ;;  %v442_v55 = vsel %vm381_vm0, %v433_v53, 0.0 }
 0x11e   : > { %410 = vadd.xlane.f32.xlu0 %v409_v52  ;;  %v490_v59 = vsel %vm381_vm0, %v480_v54, 0.0 }
 0x120   : > { %v512_v56 = vpop.permute.xlu0 %511 }
 0x121   : > { %v514_v57 = vpop.permute.xlu1 %513  ;;  %v520_v58 = vsel %vm381_vm0, %v512_v56, 0.0 }
 0x122   : > { %521 = vadd.xlane.f32.xlu1 %v520_v58  ;;  %443 = vadd.xlane.f32.xlu0 %v442_v55  ;;  %v523_v63 = vsel %vm381_vm0, %v514_v57, 0.0  ;;  %v354_v57 = vshrl.u32 %v353_v49, 7 }
 0x124   : > { %v417_v60 = vpop.permute.xlu0 %416 }
 0x125   : > { %v427_v61 = vsel %vm381_vm0, %v417_v60, 0.0  ;;  %v498_v62 = vpop.permute.xlu1 %497 }
 0x126   : > { %428 = vadd.xlane.f32.xlu1 %v427_v61  ;;  %491 = vadd.xlane.f32.xlu0 %v490_v59  ;;  %v508_v2 = vsel %vm381_vm0, %v498_v62, 0.0  ;;  %v355_v61 = vadd.s32 8, %v354_v57 }
 0x128   : > { %v435_v0 = vpop.permute.xlu0 %434 }
 0x129   : > { %v445_v1 = vsel %vm381_vm0, %v435_v0, 0.0  ;;  %v516_v3 = vpop.permute.xlu1 %515 }
 0x12a   : > { %446 = vadd.xlane.f32.xlu1 %v445_v1  ;;  %524 = vadd.xlane.f32.xlu0 %v523_v63  ;;  %v526_v4 = vsel %vm381_vm0, %v516_v3, 0.0 }
 0x12e   : > { %509 = vadd.xlane.f32.xlu0 %v508_v2 }
 0x132   : > { %527 = vadd.xlane.f32.xlu0 %v526_v4 }
 0x162   : > { %v384_v7 = vpop.xlane.xlu0 %383 }
 0x166   : > { %v468_v9 = vpop.xlane.xlu0 %467 }
 0x168   : > { %v387_v5 = vpop.xlane.xlu1 %386 }
 0x16c   : > { %v465_v6 = vpop.xlane.xlu1 %464 }
 0x170   : > { %v390_v8 = vpop.xlane.xlu1 %389 }
 0x174   : > { %v471_v10 = vpop.xlane.xlu1 %470 }
 0x197   : > { %v405_v11 = vpop.xlane.xlu0 %404 }
 0x198   : > { %v486_v12 = vpop.xlane.xlu1 %485  ;;  %v449_v20 = vsel %vm448_vm1, %v384_v7, %v405_v11 }
 0x199   : > { %v529_v24 = vsel %vm448_vm1, %v465_v6, %v486_v12  ;;  %v590_v6 = vstv %s352_s20 }
 0x19b   : > { %v408_v13 = vpop.xlane.xlu0 %407 }
 0x19c   : > { %v450_v25 = vsel %vm448_vm1, %v387_v5, %v408_v13 }
 0x19f   : > { %v423_v14 = vpop.xlane.xlu1 %422  ;;  %v489_v15 = vpop.xlane.xlu0 %488 }
 0x1a0   : > { %v453_v22 = vsel %vm452_vm2, %v449_v20, %v423_v14  ;;  %v530_v34 = vsel %vm448_vm1, %v468_v9, %v489_v15  ;;  %v356_v14 = vadd.s32 16, %v354_v57 }
 0x1a3   : > { %v426_v16 = vpop.xlane.xlu0 %425  ;;  %v504_v17 = vpop.xlane.xlu1 %503 }
 0x1a4   : > { %v532_v26 = vsel %vm452_vm2, %v529_v24, %v504_v17  ;;  %v454_v29 = vsel %vm452_vm2, %v450_v25, %v426_v16  ;;  %v591_v16 = vadd.s32 %v590_v6, %v354_v57 }
 0x1a7   : > { %v507_v18 = vpop.xlane.xlu0 %506 }
 0x1a8   : > { %v441_v19 = vpop.xlane.xlu1 %440  ;;  %v533_v36 = vsel %vm452_vm2, %v530_v34, %v507_v18 }
 0x1a9   : > { %v457_v23 = vsel %vm456_vm3, %v453_v22, %v441_v19 }
 0x1aa   : > { %823 = vrsqrt.f32 %v457_v23  ;;  %vm540_vm5 = vcmp.eq.f32.partialorder %v457_v23, inf  ;;  %v543_v58 = vand.u32 2147483648, %v457_v23  ;;  %vm542_vm7 = vcmp.eq.f32.partialorder %v457_v23, 0.0 }
 0x1ab   : > { %v411_v21 = vpop.xlane.xlu0 %410 }
 0x1ac   : > { %v451_v35 = vsel %vm448_vm1, %v390_v8, %v411_v21 }
 0x1af   : > { %v522_v27 = vpop.xlane.xlu1 %521  ;;  %v444_v28 = vpop.xlane.xlu0 %443 }
 0x1b0   : > { %v535_v30 = vsel %vm456_vm3, %v532_v26, %v522_v27  ;;  %v458_v31 = vsel %vm456_vm3, %v454_v29, %v444_v28  ;;  %v593_v26 = vadd.s32 %v590_v6, %v356_v14 }
 0x1b1   : > { %825 = vrsqrt.f32 %v535_v30  ;;  %vm561_vm4 = vcmp.eq.f32.partialorder %v535_v30, inf  ;;  %v564_v54 = vand.u32 2147483648, %v535_v30  ;;  %vm563_vm6 = vcmp.eq.f32.partialorder %v535_v30, 0.0 }
 0x1b2   : > { %827 = vrsqrt.f32 %v458_v31  ;;  %vm547_vm8 = vcmp.eq.f32.partialorder %v458_v31, inf  ;;  %v550_v2 = vand.u32 2147483648, %v458_v31  ;;  %vm549_vm10 = vcmp.eq.f32.partialorder %v458_v31, 0.0 }
 0x1b3   : > { %v429_v32 = vpop.xlane.xlu1 %428  ;;  %v492_v33 = vpop.xlane.xlu0 %491 }
 0x1b4   : > { %v455_v37 = vsel %vm452_vm2, %v451_v35, %v429_v32  ;;  %v824_v42 = vpop.eup %823  ;;  %v531_v48 = vsel %vm448_vm1, %v471_v10, %v492_v33  ;;  %v592_v10 = vadd.s32 %v590_v6, %v355_v61  ;;  %vm594_vm1 = vcmp.lt.s32.totalorder %v591_v16, 26 }
 0x1b5   : > { %v539_v47 = vmul.f32 %v824_v42, %v457_v23 }
 0x1b6   : > { %vm595_vm13 = vcmp.lt.s32.totalorder %v592_v10, 26 }
 0x1b7   : > { %v447_v38 = vpop.xlane.xlu1 %446  ;;  %v525_v39 = vpop.xlane.xlu0 %524  ;;  %v541_v56 = vsel %vm540_vm5, %v457_v23, %v539_v47 }
 0x1b8   : > { %v1251_v40 = vsel %vm456_vm3, %v455_v37, %v447_v38  ;;  %v536_v41 = vsel %vm456_vm3, %v533_v36, %v525_v39  ;;  %v544_v1 = vsel %vm542_vm7, %v543_v58, %v541_v56  ;;  %v987_v38 = vmov 0.0  }
 0x1b9   : > { %829 = vrsqrt.f32 %v536_v41  ;;  %vm568_vm9 = vcmp.eq.f32.partialorder %v536_v41, inf  ;;  %v571_v3 = vand.u32 2147483648, %v536_v41  ;;  %vm570_vm11 = vcmp.eq.f32.partialorder %v536_v41, 0.0 }
 0x1ba   : > { %831 = vrsqrt.f32 %v1251_v40  ;;  %vm554_vm12 = vcmp.eq.f32.partialorder %v1251_v40, inf  ;;  %v557_v19 = vand.u32 2147483648, %v1251_v40  ;;  %vm556_vm15 = vcmp.eq.f32.partialorder %v1251_v40, 0.0 }
 0x1bb   : > { %v826_v43 = vpop.eup %825  ;;  %v510_v44 = vpop.xlane.xlu0 %509 }
 0x1bc   : > { %v560_v45 = vmul.f32 %v826_v43, %v535_v30  ;;  %v828_v46 = vpop.eup %827  ;;  %v534_v50 = vsel %vm452_vm2, %v531_v48, %v510_v44  ;;  %vm600_vm2 = vcmask 31744  }
 0x1bd   : > { %v546_v55 = vmul.f32 %v828_v46, %v458_v31 }
 0x1be   : > { %v562_v52 = vsel %vm561_vm4, %v535_v30, %v560_v45  ;;  %vm349_vm4 = vcmask 0  }
 0x1bf   : > { %v528_v51 = vpop.xlane.xlu0 %527  ;;  %v565_v59 = vsel %vm563_vm6, %v564_v54, %v562_v52  ;;  %v548_v63 = vsel %vm547_vm8, %v458_v31, %v546_v55  ;;  %350 = vst.msk [vmem:[%s344_s21] sm:$0x1] %vm349_vm4, %v987_v38 }
 0x1c0   : > { %v537_v53 = vsel %vm456_vm3, %v534_v50, %v528_v51  ;;  %v580_v4 = vsub.f32 %v544_v1, %v565_v59  ;;  %v551_v8 = vsel %vm549_vm10, %v550_v2, %v548_v63  ;;  %vm596_vm3 = vcmp.lt.s32.totalorder %v593_v26, 26 }
 0x1c1   : > { %833 = vrsqrt.f32 %v537_v53  ;;  %vm575_vm14 = vcmp.eq.f32.partialorder %v537_v53, inf  ;;  %v578_v20 = vand.u32 2147483648, %v537_v53  ;;  %vm577_vm0 = vcmp.eq.f32.partialorder %v537_v53, 0.0 }
 0x1c2   : > { %v583_v12 = vadd.f32 1.0, %v580_v4 }
 0x1c3   : > { %v830_v60 = vpop.eup %829 }
 0x1c4   : > { %v832_v62 = vpop.eup %831  ;;  %v567_v0 = vmul.f32 %v830_v60, %v536_v41  ;;  %v586_v23 = vmax.f32 %v583_v12, 0.0 }
 0x1c5   : > { %v553_v7 = vmul.f32 %v832_v62, %v1251_v40 }
 0x1c6   : > { %v569_v5 = vsel %vm568_vm9, %v536_v41, %v567_v0  ;;  %v597_v30 = vsel %vm594_vm1, %v586_v23, 0.0  ;;  %v617_v46 = vld [vmem:[%s344_s21] sm:$0x1] }
 0x1c7   : > { %v572_v9 = vsel %vm570_vm11, %v571_v3, %v569_v5  ;;  %v555_v18 = vsel %vm554_vm12, %v1251_v40, %v553_v7  ;;  %v601_v33 = vsel %vm600_vm2, %v597_v30, 0.0 }
 0x1c8   : > { %v581_v11 = vsub.f32 %v551_v8, %v572_v9  ;;  %v558_v24 = vsel %vm556_vm15, %v557_v19, %v555_v18 }
 0x1ca   : > { %v584_v15 = vadd.f32 1.0, %v581_v11 }
 0x1cb   : > { %v834_v13 = vpop.eup %833 }
 0x1cc   : > { %v574_v17 = vmul.f32 %v834_v13, %v537_v53  ;;  %v587_v21 = vmax.f32 %v584_v15, 0.0 }
 0x1ce   : > { %v576_v22 = vsel %vm575_vm14, %v537_v53, %v574_v17  ;;  %v598_v28 = vsel %vm595_vm13, %v587_v21, 0.0 }
 0x1cf   : > { %v579_v25 = vsel %vm577_vm0, %v578_v20, %v576_v22  ;;  %v602_v31 = vsel %vm600_vm2, %v598_v28, 0.0 }
 0x1d0   : > { %v582_v27 = vsub.f32 %v558_v24, %v579_v25  ;;  %v603_v35 = vadd.f32 %v602_v31, %v601_v33 }
 0x1d2   : > { %v585_v29 = vadd.f32 1.0, %v582_v27 }
 0x1d4   : > { %v588_v32 = vmax.f32 %v585_v29, 0.0 }
 0x1d6   : > { %v599_v34 = vsel %vm596_vm3, %v588_v32, 0.0 }
 0x1d7   : > { %v604_v36 = vsel %vm600_vm2, %v599_v34, 0.0 }
 0x1d8   : > { %v605_v37 = vadd.f32 %v604_v36, %v603_v35 }
 0x1da   : > { %606 = vadd.xlane.f32.xlu1 %v605_v37 }
 0x267   : > { %v607_v39 = vpop.xlane.xlu1 %606 }
 0x268   : > { %v608_v40 = vrot.slane %v607_v39, 4 }
 0x26a   : > { %v609_v41 = vadd.f32 %v608_v40, %v607_v39 }
 0x26c   : > { %v610_v42 = vrot.slane %v609_v41, 2 }
 0x26e   : > { %v611_v43 = vadd.f32 %v610_v42, %v609_v41 }
 0x270   : > { %v612_v44 = vrot.slane %v611_v43, 1 }
 0x272   : > { %v613_v45 = vadd.f32 %v612_v44, %v611_v43 }
 0x274   : > { %760 = vpush %v613_v45 }
 0x2a5   : > { %s761_s24 = spop %760 }
 0x2a6   : > { %v615_v47 = vstv %s761_s24 }
 0x2a7   : > { %v618_v48 = vadd.f32 %v617_v46, %v615_v47 }
 0x2a9   : > { %620 = vst.msk [vmem:[%s344_s21] sm:$0x1] %vm349_vm4, %v618_v48 }
 0x2aa PF: > { %s19_s17 = sadd.s32 1, %s973_s17   ;;  %s1295_s12 = smov %s957_s13 }
 0x2ab   : > { %p16_p7 = scmp.ge.s32.totalorder %s19_s17, 4   ;;  %s1296_s13 = smov %s961_s14 }
 0x2ac   : > { %s1297_s14 = smov %s1063_s26  ;;  %s1298_s15 = smov %s969_s16 }
 0x2ad   : > { %s1299_s16 = smov %s1301_s18  ;;  %18 = sbr.rel (!%p16_p7) target bundleno = 6 (0x6), region = 100 }
 0x2b4   :  { %638 = vsyncpa [#allocation3], 1 }
 0x2b5   :  { %640 = vsyncpa [#allocation3 + $0x1], 1 }
 0x2b6   :  { %641 = vsyncpa [#allocation5], 1 }
 0x2b7   :  { %643 = vsyncpa [#allocation5 + $0x1], 1 }

</bundles_post_ra>
